<compile_context>
chip_gen: v7x
topology: tpu7x:2x2x1
jax: 0.10.0
libtpu: 0.0.40
codegen_flags: <defaults>
</compile_context>

<pallas_src>
import jax
import jax.numpy as jnp
from jax.experimental import pallas as pl
from jax.experimental.pallas import tpu as pltpu

N_BINS = 15


def _ece_partial_kernel(nvalid_ref, logits_ref, labels_ref, lo_ref, up_ref, out_ref):
    """Per-tile partial bin sums -> lane-dense (1, 8, 128) block.

    Rows of the output block: 0 = count, 1 = sum(conf), 2 = sum(acc), 3..7 = 0.
    Lanes 0..n_bins-1 hold the bins, the rest are 0.
    """
    t, c = logits_ref.shape

    # Validity mask for the ragged last tile (global row index < true N).
    row = jax.lax.broadcasted_iota(jnp.int32, (t, 1), 0)
    gid = pl.program_id(0) * t + row
    valid_b = gid < nvalid_ref[0]                              # [T, 1] bool
    valid = valid_b.astype(jnp.float32)

    # Mask BEFORE any math: out-of-bounds rows hold undefined data and must not
    # inject NaN/Inf (0 * NaN = NaN would poison this tile's partial sums).
    x = jnp.where(valid_b, logits_ref[...],
                  jnp.zeros((), logits_ref.dtype))             # [T, C] native dtype

    # Max / first-argmax path in the input dtype (bf16-native on v6e/v7x; the
    # upcast is monotone so the argmax is unchanged).
    m = jnp.max(x, axis=1, keepdims=True)                      # [T, 1]
    col = jax.lax.broadcasted_iota(jnp.int32, (t, c), 1)
    pred = jnp.min(jnp.where(x == m, col, c), axis=1, keepdims=True)  # first argmax
    acc = (pred == labels_ref[...]).astype(jnp.float32)        # [T, 1]

    # confidence = max softmax prob = 1 / sum(exp(x - max)); probs never built.
    s = jnp.sum(jnp.exp(x.astype(jnp.float32) - m.astype(jnp.float32)),
                axis=1, keepdims=True)                         # [T, 1] f32
    conf = 1.0 / s                                             # exact divide

    # Bin membership with the reference's exact (lo, up] compares, lane-dense
    # [T, 128] (lanes >= n_bins have lo >= 2 so they can never match: conf <= 1).
    onehot = jnp.logical_and(conf > lo_ref[...],
                             conf <= up_ref[...]).astype(jnp.float32)   # [T, 128]

    # All three bin reductions at once as one tiny MXU contraction over the
    # batch (sublane) axis; HIGHEST precision keeps f32 accuracy of the sums.
    stats = jnp.concatenate(
        [valid, conf * valid, acc * valid, jnp.zeros((t, 5), jnp.float32)],
        axis=1)                                                # [T, 8]
    res = jax.lax.dot_general(
        stats, onehot, (((0,), (0,)), ((), ())),
        precision=jax.lax.Precision.HIGHEST,
        preferred_element_type=jnp.float32)                    # [8, 128]
    out_ref[...] = res.reshape(1, 8, 128)


def _vmem_limit_bytes():
    """Generation-aware scoped-VMEM limit (v7x ~48 MiB, v5e/v6e ~96 MiB)."""
    try:
        cap = int(pltpu.get_tpu_info().vmem_capacity_bytes)
    except Exception:
        cap = 64 * 1024 * 1024  # conservative fallback (safe on every generation)
    return min(cap * 3 // 4, 96 * 1024 * 1024)


def _choose_tile_n(n, c, itemsize, vmem_limit_bytes):
    """Pick tile rows from a per-row VMEM estimate (logits + labels + temps)."""
    cpad = ((c + 127) // 128) * 128          # VMEM lane padding of the logits tile
    per_row = (2 * cpad * itemsize           # logits input, double-buffered, lane-padded
               + 2 * 128 * 4                 # labels [T,1] i32 block lane-pads to 128, x2 bufs
               + 4 * cpad * 4                # in-kernel [T, C]-sized f32/i32 temporaries
               + 3 * 128 * 4                 # [T, 128] bin mask + boundary compares
               + 128)                        # small [T,1]/[T,8] vectors
    budget = max(vmem_limit_bytes // 2, 4 * 1024 * 1024)   # headroom for compiler scratch
    tile = max(8, (budget // per_row) // 8 * 8)
    tile = min(tile, 32768)                  # keep f32 partial sums well below 2^24
    n_pad8 = ((n + 7) // 8) * 8
    return max(8, min(tile, n_pad8))


def ece_pallas(logits, labels, n_bins=N_BINS, tile_n=None):
    assert 0 < n_bins <= 128
    n, c = logits.shape
    labels2d = labels.reshape(n, 1).astype(jnp.int32)

    vmem_limit = _vmem_limit_bytes()
    if tile_n is None:
        tile_n = _choose_tile_n(n, c, jnp.dtype(logits.dtype).itemsize, vmem_limit)
    tile_n = max(8, (int(tile_n) // 8) * 8)
    num_tiles = -(-n // tile_n)              # ragged last tile handled in-kernel (no jnp.pad)

    # Exact (lo, up] bin boundaries, lane-padded to 128 (padding lanes never match).
    lo = jnp.array([b / n_bins for b in range(n_bins)] + [2.0] * (128 - n_bins),
                   dtype=jnp.float32).reshape(1, 128)
    up = jnp.array([(b + 1) / n_bins for b in range(n_bins)] + [3.0] * (128 - n_bins),
                   dtype=jnp.float32).reshape(1, 128)

    n_valid = jnp.array([n], dtype=jnp.int32)   # scalar-prefetched into SMEM

    # TODO(synk): small-C lane packing (pack 128//C examples per 128-lane row and
    # reduce per example with masked pltpu.roll steps) would recover up to
    # (128/C)x lane/DMA/VMEM utilization for tiny class counts.

    partials = pl.pallas_call(
        _ece_partial_kernel,
        out_shape=jax.ShapeDtypeStruct((num_tiles, 8, 128), jnp.float32),
        grid_spec=pltpu.PrefetchScalarGridSpec(
            num_scalar_prefetch=1,
            grid=(num_tiles,),
            in_specs=[
                pl.BlockSpec((tile_n, c), lambda i, nv: (i, 0)),   # logits
                pl.BlockSpec((tile_n, 1), lambda i, nv: (i, 0)),   # labels
                pl.BlockSpec((1, 128), lambda i, nv: (0, 0)),      # bin lowers
                pl.BlockSpec((1, 128), lambda i, nv: (0, 0)),      # bin uppers
            ],
            out_specs=pl.BlockSpec((1, 8, 128), lambda i, nv: (i, 0, 0)),
        ),
        compiler_params=pltpu.CompilerParams(
            dimension_semantics=("parallel",),
            vmem_limit_bytes=vmem_limit,
        ),
    )(n_valid, logits, labels2d, lo, up)

    # Tiny cross-tile reduction + ECE epilogue in plain JAX.
    sums = jnp.sum(partials, axis=0)             # [8, 128]
    cnt = sums[0, :n_bins]
    sum_conf = sums[1, :n_bins]
    sum_acc = sums[2, :n_bins]
    safe = jnp.maximum(cnt, 1.0)
    contrib = jnp.abs(sum_conf / safe - sum_acc / safe) * (cnt / n)
    return jnp.sum(jnp.where(cnt > 0.0, contrib, 0.0)).reshape(1)


def ece_reference(logits, labels, n_bins=N_BINS):
    """Pure-JAX reference matching the PyTorch ECE module."""
    probs = jax.nn.softmax(logits.astype(jnp.float32), axis=1)
    conf = jnp.max(probs, axis=1)
    pred = jnp.argmax(probs, axis=1)
    acc = (pred == labels).astype(jnp.float32)
    n = conf.shape[0]
    ece = jnp.zeros((1,), jnp.float32)
    for b in range(n_bins):
        lo = float(b) / n_bins
        up = float(b + 1) / n_bins
        in_bin = jnp.logical_and(conf > lo, conf <= up).astype(jnp.float32)
        cnt = jnp.sum(in_bin)
        safe = jnp.maximum(cnt, 1.0)
        contrib = jnp.abs(jnp.sum(conf * in_bin) / safe
                          - jnp.sum(acc * in_bin) / safe) * (cnt / n)
        ece = ece + jnp.where(cnt > 0.0, contrib, 0.0)
    return ece


if __name__ == "__main__":
    key = jax.random.PRNGKey(0)
    k1, k2 = jax.random.split(key)
    N, C = 64, 8  # small batch of logits over 8 classes
    logits = jax.random.normal(k1, (N, C), dtype=jnp.float32) * 2.0
    labels = jax.random.randint(k2, (N,), 0, C, dtype=jnp.int32)

    out = jax.block_until_ready(ece_pallas(logits, labels))
    ref = ece_reference(logits, labels)
    assert out.shape == (1,)
    assert jnp.allclose(out, ref, atol=1e-6), (out, ref)

    # Exercise the unpadded ragged multi-tile path (last block overhangs N).
    k3, k4 = jax.random.split(k2)
    N2 = 200
    logits2 = jax.random.normal(k3, (N2, C), dtype=jnp.float32) * 2.0
    labels2 = jax.random.randint(k4, (N2,), 0, C, dtype=jnp.int32)
    out2 = jax.block_until_ready(ece_pallas(logits2, labels2, tile_n=64))
    ref2 = ece_reference(logits2, labels2)
    assert jnp.allclose(out2, ref2, atol=1e-6), (out2, ref2)

    print("KERNEL_OK")
</pallas_src>

<mosaic_0001>
module attributes {stable_mosaic.version = 11 : i64} {
  func.func @_ece_partial_kernel(%arg0: i32, %arg1: memref<1xi32, #tpu.memory_space<smem>>, %arg2: memref<64x8xf32, #tpu.memory_space<vmem>>, %arg3: memref<64x1xi32, #tpu.memory_space<vmem>>, %arg4: memref<1x128xf32, #tpu.memory_space<vmem>>, %arg5: memref<1x128xf32, #tpu.memory_space<vmem>>, %arg6: memref<1x8x128xf32, #tpu.memory_space<vmem>>) attributes {dimension_semantics = [#tpu.dimension_semantics<parallel>], iteration_bounds = array<i64: 1>, scalar_prefetch = 1 : i64, scratch_operands = 0 : i64, tpu.core_type = #tpu.core_type<tc>, window_params = [{transform_indices = @transform_0, window_bounds = array<i64: 64, 8>}, {transform_indices = @transform_1, window_bounds = array<i64: 64, 1>}, {pipeline_mode = #tpu.pipeline_mode<synchronous>, transform_indices = @transform_2, window_bounds = array<i64: 1, 128>}, {pipeline_mode = #tpu.pipeline_mode<synchronous>, transform_indices = @transform_3, window_bounds = array<i64: 1, 128>}, {transform_indices = @transform_4, window_bounds = array<i64: 1, 8, 128>}]} {
    %0 = tpu.iota {dimensions = array<i32: 0>} : vector<64x1xi32>
    %c64_i32 = arith.constant 64 : i32
    %1 = arith.muli %arg0, %c64_i32 : i32
    %2 = vector.broadcast %1 : i32 to vector<64x1xi32>
    %3 = arith.addi %2, %0 : vector<64x1xi32>
    %c0 = arith.constant 0 : index
    %4 = memref.load %arg1[%c0] : memref<1xi32, #tpu.memory_space<smem>>
    %5 = vector.broadcast %4 : i32 to vector<64x1xi32>
    %6 = arith.cmpi slt, %3, %5 : vector<64x1xi32>
    %7 = arith.extui %6 : vector<64x1xi1> to vector<64x1xi32>
    %8 = arith.sitofp %7 : vector<64x1xi32> to vector<64x1xf32>
    %c0_0 = arith.constant 0 : index
    %c0_1 = arith.constant 0 : index
    %9 = vector.load %arg2[%c0_0, %c0_1] : memref<64x8xf32, #tpu.memory_space<vmem>>, vector<64x8xf32>
    %cst = arith.constant 0.000000e+00 : f32
    %10 = vector.shape_cast %6 : vector<64x1xi1> to vector<64x1xi1>
    %11 = vector.broadcast %10 : vector<64x1xi1> to vector<64x8xi1>
    %12 = vector.broadcast %cst : f32 to vector<64x8xf32>
    %13 = arith.select %11, %9, %12 : vector<64x8xi1>, vector<64x8xf32>
    %cst_2 = arith.constant dense<0xFF800000> : vector<64xf32>
    %14 = vector.multi_reduction <maximumf>, %13, %cst_2 [1] : vector<64x8xf32> to vector<64xf32>
    %15 = vector.shape_cast %14 : vector<64xf32> to vector<64x1xf32>
    %16 = tpu.iota {dimensions = array<i32: 1>} : vector<64x8xi32>
    %17 = vector.broadcast %15 : vector<64x1xf32> to vector<64x8xf32>
    %18 = arith.cmpf oeq, %13, %17 : vector<64x8xf32>
    %c8_i32 = arith.constant 8 : i32
    %19 = vector.broadcast %c8_i32 : i32 to vector<64x8xi32>
    %20 = arith.select %18, %16, %19 : vector<64x8xi1>, vector<64x8xi32>
    %cst_3 = arith.constant dense<2147483647> : vector<64xi32>
    %21 = vector.multi_reduction <minsi>, %20, %cst_3 [1] : vector<64x8xi32> to vector<64xi32>
    %22 = vector.shape_cast %21 : vector<64xi32> to vector<64x1xi32>
    %c0_4 = arith.constant 0 : index
    %c0_5 = arith.constant 0 : index
    %23 = vector.load %arg3[%c0_4, %c0_5] : memref<64x1xi32, #tpu.memory_space<vmem>>, vector<64x1xi32>
    %24 = arith.cmpi eq, %22, %23 : vector<64x1xi32>
    %25 = arith.extui %24 : vector<64x1xi1> to vector<64x1xi32>
    %26 = arith.sitofp %25 : vector<64x1xi32> to vector<64x1xf32>
    %27 = vector.broadcast %15 : vector<64x1xf32> to vector<64x8xf32>
    %28 = arith.subf %13, %27 : vector<64x8xf32>
    %29 = math.exp %28 : vector<64x8xf32>
    %cst_6 = arith.constant dense<0.000000e+00> : vector<64xf32>
    %30 = vector.multi_reduction <add>, %29, %cst_6 [1] : vector<64x8xf32> to vector<64xf32>
    %31 = vector.shape_cast %30 : vector<64xf32> to vector<64x1xf32>
    %cst_7 = arith.constant 1.000000e+00 : f32
    %32 = vector.broadcast %cst_7 : f32 to vector<64x1xf32>
    %33 = arith.divf %32, %31 : vector<64x1xf32>
    %c0_8 = arith.constant 0 : index
    %c0_9 = arith.constant 0 : index
    %34 = vector.load %arg4[%c0_8, %c0_9] : memref<1x128xf32, #tpu.memory_space<vmem>>, vector<1x128xf32>
    %35 = vector.broadcast %33 : vector<64x1xf32> to vector<64x128xf32>
    %36 = vector.broadcast %34 : vector<1x128xf32> to vector<64x128xf32>
    %37 = arith.cmpf ogt, %35, %36 : vector<64x128xf32>
    %c0_10 = arith.constant 0 : index
    %c0_11 = arith.constant 0 : index
    %38 = vector.load %arg5[%c0_10, %c0_11] : memref<1x128xf32, #tpu.memory_space<vmem>>, vector<1x128xf32>
    %39 = vector.broadcast %33 : vector<64x1xf32> to vector<64x128xf32>
    %40 = vector.broadcast %38 : vector<1x128xf32> to vector<64x128xf32>
    %41 = arith.cmpf ole, %39, %40 : vector<64x128xf32>
    %42 = arith.andi %37, %41 : vector<64x128xi1>
    %43 = arith.extui %42 : vector<64x128xi1> to vector<64x128xi32>
    %44 = arith.sitofp %43 : vector<64x128xi32> to vector<64x128xf32>
    %45 = arith.mulf %33, %8 : vector<64x1xf32>
    %46 = arith.mulf %26, %8 : vector<64x1xf32>
    %cst_12 = arith.constant 0.000000e+00 : f32
    %47 = vector.broadcast %cst_12 : f32 to vector<64x5xf32>
    %48 = tpu.concatenate %8, %45, %46, %47 in 1 : vector<64x1xf32>, vector<64x1xf32>, vector<64x1xf32>, vector<64x5xf32> -> vector<64x8xf32>
    %cst_13 = arith.constant dense<0.000000e+00> : vector<8x128xf32>
    %49 = tpu.matmul %48, %44, %cst_13 {dimension_numbers = #tpu.dot_dimension_numbers<[0], [0], [1], [1], [0, 1, 1, 1], [], []>, precision = #tpu.contract_precision<fp32>} : vector<64x8xf32>, vector<64x128xf32>, vector<8x128xf32> -> vector<8x128xf32>
    %50 = vector.shape_cast %49 : vector<8x128xf32> to vector<1x8x128xf32>
    %c0_14 = arith.constant 0 : index
    %c0_15 = arith.constant 0 : index
    %c0_16 = arith.constant 0 : index
    %51 = vector.load %arg6[%c0_14, %c0_15, %c0_16] : memref<1x8x128xf32, #tpu.memory_space<vmem>>, vector<1x8x128xf32>
    tpu.vector_store %arg6[%c0_14, %c0_15, %c0_16], %50 {strides = array<i32>} : memref<1x8x128xf32, #tpu.memory_space<vmem>>, vector<1x8x128xf32>,
    return
  }
  func.func @transform_0(%arg0: i32, %arg1: memref<1xi32, #tpu.memory_space<smem>>) -> (i32, i32) {
    %c0_i32 = arith.constant 0 : i32
    %c0_i32_0 = arith.constant 0 : i32
    return %arg0, %c0_i32 : i32, i32
  }
  func.func @transform_1(%arg0: i32, %arg1: memref<1xi32, #tpu.memory_space<smem>>) -> (i32, i32) {
    %c0_i32 = arith.constant 0 : i32
    %c0_i32_0 = arith.constant 0 : i32
    return %arg0, %c0_i32 : i32, i32
  }
  func.func @transform_2(%arg0: i32, %arg1: memref<1xi32, #tpu.memory_space<smem>>) -> (i32, i32) {
    %c0_i32 = arith.constant 0 : i32
    %c0_i32_0 = arith.constant 0 : i32
    %c0_i32_1 = arith.constant 0 : i32
    return %c0_i32, %c0_i32_0 : i32, i32
  }
  func.func @transform_3(%arg0: i32, %arg1: memref<1xi32, #tpu.memory_space<smem>>) -> (i32, i32) {
    %c0_i32 = arith.constant 0 : i32
    %c0_i32_0 = arith.constant 0 : i32
    %c0_i32_1 = arith.constant 0 : i32
    return %c0_i32, %c0_i32_0 : i32, i32
  }
  func.func @transform_4(%arg0: i32, %arg1: memref<1xi32, #tpu.memory_space<smem>>) -> (i32, i32, i32) {
    %c0_i32 = arith.constant 0 : i32
    %c0_i32_0 = arith.constant 0 : i32
    %c0_i32_1 = arith.constant 0 : i32
    return %arg0, %c0_i32, %c0_i32_0 : i32, i32, i32
  }
}

</mosaic_0001>

<bundles_post_ra>
// kernel: tpu_custom_call.1
= control target key start
LH: loop header
LB: loop body
LE: loop exit
PB: predicated region body
PF: predicated region fallthrough
CT: control target
= control target key end

     0   :  { %v20_v0 = vlaneseq  ;;  %s2099_s0 = inlined_call_operand.<no memory space> [shape: s32[1], index: 0, kind: input, shape index: {}]   ;;  %s2100_s1 = inlined_call_operand.vmem [shape: f32[64,8], index: 1, kind: input, shape index: {}]   ;;  %s2101_s2 = inlined_call_operand.vmem [shape: s32[64,1], index: 2, kind: input, shape index: {}]   ;;  %s2102_s3 = inlined_call_operand.vmem [shape: f32[1,128], index: 3, kind: input, shape index: {}]   ;;  %s2103_s4 = inlined_call_operand.vmem [shape: f32[1,128], index: 4, kind: input, shape index: {}]   ;;  %s2104_s5 = inlined_call_operand.hbm [shape: f32[1,8,128], index: 5, kind: output, shape index: {}]  }
   0x1   :  { %v1465_v1 = vstv %s2099_s0  ;;  %v65_v3 = vld [vmem:[%s2100_s1] sm:$0xff] }
   0x2   :  { %v1467_v2 = vshrl.u32 %v20_v0, 7 }
   0x3   :  { %11 = vsyncpa [#allocation5], 0  ;;  %vm89_vm0 = vcmask 64512   ;;  %v67_v5 = vld [vmem:[%s2100_s1 + $0x10] sm:$0xff]  ;;  %v66_v7 = vld [vmem:[%s2100_s1 + $0x8] sm:$0xff]  ;;  %v115_v34 = vand.u32 127, %v20_v0 }
   0x4   :  { %vm41_vm1 = vcmp.lt.s32.totalorder %v1467_v2, %v1465_v1  ;;  %v1475_v4 = vadd.s32 16, %v1467_v2  ;;  %v1481_v6 = vadd.s32 8, %v1467_v2  ;;  %v1487_v8 = vadd.s32 24, %v1467_v2  ;;  %v68_v10 = vld [vmem:[%s2100_s1 + $0x18] sm:$0xff]  ;;  %v69_v16 = vld [vmem:[%s2100_s1 + $0x20] sm:$0xff]  ;;  %v70_v20 = vld [vmem:[%s2100_s1 + $0x28] sm:$0xff] }
   0x5   :  { %v1492_v9 = vsel %vm41_vm1, %v65_v3, 0.0  ;;  %v1498_v11 = vadd.s32 32, %v1467_v2  ;;  %v1501_v12 = vadd.s32 40, %v1467_v2  ;;  %v1541_v21 = vadd.s32 48, %v1467_v2  ;;  %v71_v24 = vld [vmem:[%s2100_s1 + $0x30] sm:$0xff]  ;;  %v72_v28 = vld [vmem:[%s2100_s1 + $0x38] sm:$0xff] }
   0x6   :  { %v90_v13 = vsel %vm89_vm0, %v1492_v9, -inf  ;;  %vm43_vm2 = vcmp.lt.s32.totalorder %v1475_v4, %v1465_v1  ;;  %vm42_vm3 = vcmp.lt.s32.totalorder %v1481_v6, %v1465_v1  ;;  %vm44_vm4 = vcmp.lt.s32.totalorder %v1487_v8, %v1465_v1  ;;  %s1428_s15 = smov 2  }
   0x7   :  { %91 = vmax.xlane.f32.xlu0 %v90_v13  ;;  %v1514_v14 = vsel %vm43_vm2, %v67_v5, 0.0  ;;  %v1519_v15 = vsel %vm42_vm3, %v66_v7, 0.0  ;;  %v1531_v19 = vsel %vm44_vm4, %v68_v10, 0.0  ;;  %vm45_vm5 = vcmp.lt.s32.totalorder %v1498_v11, %v1465_v1  ;;  %v258_v11 = vld [vmem:[%s2101_s2 + $0x30] sm:$0xff] }
   0x8   :  { %v96_v17 = vsel %vm89_vm0, %v1514_v14, -inf  ;;  %v93_v18 = vsel %vm89_vm0, %v1519_v15, -inf  ;;  %vm46_vm6 = vcmp.lt.s32.totalorder %v1501_v12, %v1465_v1  ;;  %v99_v22 = vsel %vm89_vm0, %v1531_v19, -inf  ;;  %v259_v12 = vld [vmem:[%s2101_s2 + $0x38] sm:$0xff] }
   0x9   :  { %97 = vmax.xlane.f32.xlu1 %v96_v17  ;;  %v1548_v23 = vsel %vm45_vm5, %v69_v16, 0.0  ;;  %v1556_v25 = vsel %vm46_vm6, %v70_v20, 0.0  ;;  %vm47_vm7 = vcmp.lt.s32.totalorder %v1541_v21, %v1465_v1  ;;  %v1561_v26 = vadd.s32 56, %v1467_v2 }
   0xa   :  { %v102_v27 = vsel %vm89_vm0, %v1548_v23, -inf  ;;  %v1571_v29 = vsel %vm47_vm7, %v71_v24, 0.0  ;;  %v105_v30 = vsel %vm89_vm0, %v1556_v25, -inf }
   0xb   :  { %94 = vmax.xlane.f32.xlu0 %v93_v18  ;;  %vm48_vm8 = vcmp.lt.s32.totalorder %v1561_v26, %v1465_v1  ;;  %v108_v32 = vsel %vm89_vm0, %v1571_v29, -inf }
   0xc   :  { %v1580_v31 = vsel %vm48_vm8, %v72_v28, 0.0 }
   0xd   :  { %100 = vmax.xlane.f32.xlu1 %v99_v22  ;;  %v111_v33 = vsel %vm89_vm0, %v1580_v31, -inf }
   0xf   :  { %103 = vmax.xlane.f32.xlu0 %v102_v27 }
  0x11   :  { %106 = vmax.xlane.f32.xlu1 %v105_v30 }
  0x13   :  { %109 = vmax.xlane.f32.xlu0 %v108_v32 }
  0x15   :  { %112 = vmax.xlane.f32.xlu1 %v111_v33 }
  0x94   :  { %v1586_v35 = vpop.xlane.xlu0 %91 }
  0x95   :  { %vm116_vm9 = vcmp.eq.f32.partialorder %v1492_v9, %v1586_v35  ;;  %v284_v27 = vsub.f32 %v1492_v9, %v1586_v35 }
  0x96   :  { %v124_v36 = vsel %vm116_vm9, %v115_v34, 8  ;;  %v1590_v37 = vpop.xlane.xlu1 %97 }
  0x97   :  { %vm118_vm10 = vcmp.eq.f32.partialorder %v1514_v14, %v1590_v37  ;;  %v132_v38 = vsel %vm89_vm0, %v124_v36, 2147483647  ;;  %v286_v33 = vsub.f32 %v1514_v14, %v1590_v37 }
  0x98   :  { %v126_v39 = vsel %vm118_vm10, %v115_v34, 8  ;;  %v1595_v40 = vpop.xlane.xlu0 %94  ;;  %v134_v41 = vshra.s32 %v132_v38, 16  ;;  %v133_v24 = vand.u32 65535, %v132_v38 }
  0x99   :  { %vm117_vm11 = vcmp.eq.f32.partialorder %v1519_v15, %v1595_v40  ;;  %v162_v45 = vsel %vm89_vm0, %v126_v39, 2147483647  ;;  %v292_v39 = vmul.f32 1.442695, %v284_v27 }
  0x9a   :  { %v125_v42 = vsel %vm117_vm11, %v115_v34, 8  ;;  %v1599_v43 = vpop.xlane.xlu1 %100  ;;  %v136_v44 = vcvt.s32.f32 %v134_v41  ;;  %v164_v48 = vshra.s32 %v162_v45, 16  ;;  %v135_v30 = vcvt.s32.f32 %v133_v24 }
  0x9b   :  { %vm119_vm12 = vcmp.eq.f32.partialorder %v1531_v19, %v1599_v43  ;;  %v147_v49 = vsel %vm89_vm0, %v125_v42, 2147483647  ;;  %v163_v32 = vand.u32 65535, %v162_v45  ;;  %v285_v41 = vsub.f32 %v1519_v15, %v1595_v40 }
  0x9c   :  { %v127_v46 = vsel %vm119_vm12, %v115_v34, 8  ;;  %137 = vmin.xlane.f32.xlu0 %v136_v44  ;;  %v1604_v47 = vpop.xlane.xlu0 %103  ;;  %v166_v52 = vcvt.s32.f32 %v164_v48  ;;  %v149_v53 = vshra.s32 %v147_v49, 16  ;;  %v148_v36 = vand.u32 65535, %v147_v49 }
  0x9d   :  { %vm120_vm13 = vcmp.eq.f32.partialorder %v1548_v23, %v1604_v47  ;;  %v1612_v54 = vsel %vm89_vm0, %v127_v46, 2147483647  ;;  %v287_v38 = vsub.f32 %v1531_v19, %v1599_v43  ;;  %v165_v35 = vcvt.s32.f32 %v163_v32 }
  0x9e   :  { %v128_v50 = vsel %vm120_vm13, %v115_v34, 8  ;;  %v1609_v51 = vpop.xlane.xlu1 %106  ;;  %v151_v56 = vcvt.s32.f32 %v149_v53  ;;  %v179_v58 = vshra.s32 %v1612_v54, 16  ;;  %v296_v42 = vmul.f32 1.442695, %v286_v33 }
  0x9f   :  { %vm121_vm14 = vcmp.eq.f32.partialorder %v1556_v25, %v1609_v51  ;;  %v192_v59 = vsel %vm89_vm0, %v128_v50, 2147483647  ;;  %v288_v45 = vsub.f32 %v1548_v23, %v1604_v47  ;;  %v150_v37 = vcvt.s32.f32 %v148_v36 }
  0xa0   :  { %v129_v55 = vsel %vm121_vm14, %v115_v34, 8  ;;  %167 = vmin.xlane.f32.xlu0 %v166_v52  ;;  %v1616_v57 = vpop.xlane.xlu0 %109  ;;  %152 = vmin.xlane.f32.xlu1 %v151_v56  ;;  %v1624_v62 = vcvt.s32.f32 %v179_v58  ;;  %v194_v63 = vshra.s32 %v192_v59, 16  ;;  %v178_v46 = vand.u32 65535, %v1612_v54 }
  0xa1   :  { %vm122_vm15 = vcmp.eq.f32.partialorder %v1571_v29, %v1616_v57  ;;  %v1627_v0 = vsel %vm89_vm0, %v129_v55, 2147483647  ;;  %v193_v15 = vand.u32 65535, %v192_v59  ;;  %1370 = vpow2.f32 %v292_v39 }
  0xa2   :  { %v130_v60 = vsel %vm122_vm15, %v115_v34, 8  ;;  %v1622_v61 = vpop.xlane.xlu1 %112  ;;  %v196_v5 = vcvt.s32.f32 %v194_v63  ;;  %v209_v7 = vshra.s32 %v1627_v0, 16  ;;  %v294_v40 = vmul.f32 1.442695, %v285_v41 }
  0xa3   :  { %vm123_vm9 = vcmp.eq.f32.partialorder %v1580_v31, %v1622_v61  ;;  %v1633_v10 = vsel %vm89_vm0, %v130_v60, 2147483647  ;;  %v298_v19 = vmul.f32 1.442695, %v287_v38  ;;  %1372 = vpow2.f32 %v296_v42 }
  0xa4   :  { %v131_v3 = vsel %vm123_vm9, %v115_v34, 8  ;;  %v224_v13 = vshra.s32 %v1633_v10, 16  ;;  %182 = vmin.xlane.f32.xlu1 %v1624_v62  ;;  %197 = vmin.xlane.f32.xlu0 %v196_v5  ;;  %v1640_v17 = vcvt.s32.f32 %v209_v7  ;;  %v300_v48 = vmul.f32 1.442695, %v288_v45 }
  0xa5   :  { %v1637_v16 = vsel %vm89_vm0, %v131_v3, 2147483647  ;;  %v289_v23 = vsub.f32 %v1556_v25, %v1609_v51  ;;  %v180_v50 = vcvt.s32.f32 %v178_v46  ;;  %v208_v53 = vand.u32 65535, %v1627_v0  ;;  %v252_v46 = vld [vmem:[%s2101_s2] sm:$0xff] }
  0xa6   :  { %v239_v18 = vshra.s32 %v1637_v16, 16  ;;  %v1643_v20 = vcvt.s32.f32 %v224_v13  ;;  %v223_v54 = vand.u32 65535, %v1633_v10  ;;  %1374 = vpow2.f32 %v294_v40 }
  0xa7   :  { %v290_v55 = vsub.f32 %v1571_v29, %v1616_v57  ;;  %1376 = vpow2.f32 %v298_v19  ;;  %v210_v60 = vcvt.s32.f32 %v208_v53  ;;  %v238_v29 = vand.u32 65535, %v1637_v16 }
  0xa8   :  { %212 = vmin.xlane.f32.xlu1 %v1640_v17  ;;  %227 = vmin.xlane.f32.xlu0 %v1643_v20  ;;  %v1647_v22 = vcvt.s32.f32 %v239_v18  ;;  %1378 = vpow2.f32 %v300_v48  ;;  %v225_v63 = vcvt.s32.f32 %v223_v54  ;;  %v1426_v38 = vmov 0.0|0.0  }
  0xa9   :  { %v304_v57 = vmul.f32 1.442695, %v290_v55  ;;  %v240_v10 = vcvt.s32.f32 %v238_v29  ;;  %1283 = vmatprep.subr.bf16.mxu1 %v1426_v38  ;;  %1319 = vmatprep.subr.bf16.mxu0 %v1426_v38  ;;  %v1427_v19 = vmov 0.0  }
  0xac   :  { %242 = vmin.xlane.f32.xlu1 %v1647_v22 }
 0x129   :  { %v1652_v28 = vpop.xlane.xlu0 %137 }
 0x12a   :  { %vm139_vm10 = vcmp.eq.f32.partialorder %v136_v44, %v1652_v28 }
 0x12b   :  { %v140_v34 = vsel %vm139_vm10, %v135_v30, inf }
 0x12c   :  { %141 = vmin.xlane.f32.xlu0 %v140_v34 }
 0x12d   :  { %v1661_v9 = vpop.xlane.xlu0 %167  ;;  %v1666_v14 = vpop.xlane.xlu1 %152 }
 0x12e   :  { %vm169_vm11 = vcmp.eq.f32.partialorder %v166_v52, %v1661_v9  ;;  %vm154_vm12 = vcmp.eq.f32.partialorder %v151_v56, %v1666_v14  ;;  %v195_v52 = vcvt.s32.f32 %v193_v15  ;;  %v302_v56 = vmul.f32 1.442695, %v289_v23 }
 0x12f   :  { %v170_v44 = vsel %vm169_vm11, %v165_v35, inf  ;;  %v155_v43 = vsel %vm154_vm12, %v150_v37, inf  ;;  %v144_v35 = vcvt.f32.s32 %v1652_v28  ;;  %v174_v37 = vcvt.f32.s32 %v1661_v9 }
 0x130   :  { %171 = vmin.xlane.f32.xlu0 %v170_v44  ;;  %156 = vmin.xlane.f32.xlu1 %v155_v43  ;;  %1380 = vpow2.f32 %v302_v56  ;;  %v159_v15 = vcvt.f32.s32 %v1666_v14  ;;  %v1718_v43 = vsel %vm41_vm1, 1.0, %v1427_v19  ;;  %v254_v14 = vld [vmem:[%s2101_s2 + $0x10] sm:$0xff] }
 0x131   :  { %v1672_v47 = vpop.xlane.xlu1 %182  ;;  %v1674_v49 = vpop.xlane.xlu0 %197  ;;  %1382 = vpow2.f32 %v304_v57  ;;  %v145_v45 = vshll.u32 %v144_v35, 16  ;;  %v175_v48 = vshll.u32 %v174_v37, 16  ;;  %v1783_v35 = vsel %vm46_vm6, 1.0, %v1427_v19 }
 0x132   :  { %vm184_vm13 = vcmp.eq.f32.partialorder %v1624_v62, %v1672_v47  ;;  %vm199_vm14 = vcmp.eq.f32.partialorder %v196_v5, %v1674_v49  ;;  %v291_v62 = vsub.f32 %v1580_v31, %v1622_v61  ;;  %v1371_v5 = vpop.eup %1370  ;;  %v189_v23 = vcvt.f32.s32 %v1672_v47 }
 0x133   :  { %v185_v25 = vsel %vm184_vm13, %v180_v50, inf  ;;  %v200_v51 = vsel %vm199_vm14, %v195_v52, inf  ;;  %v1373_v13 = vpop.eup %1372  ;;  %v308_v61 = vsel %vm89_vm0, %v1371_v5, 0.0  ;;  %v204_v50 = vcvt.f32.s32 %v1674_v49  ;;  %v253_v49 = vld [vmem:[%s2101_s2 + $0x8] sm:$0xff] }
 0x134   :  { %186 = vmin.xlane.f32.xlu1 %v185_v25  ;;  %201 = vmin.xlane.f32.xlu0 %v200_v51  ;;  %v306_v16 = vmul.f32 1.442695, %v291_v62  ;;  %v314_v27 = vsel %vm89_vm0, %v1373_v13, 0.0  ;;  %v160_v54 = vshll.u32 %v159_v15, 16  ;;  %v1731_v47 = vsel %vm43_vm2, 1.0, %v1427_v19  ;;  %v256_v13 = vld [vmem:[%s2101_s2 + $0x20] sm:$0xff] }
 0x135   :  { %v1683_v58 = vpop.xlane.xlu1 %212  ;;  %v1685_v59 = vpop.xlane.xlu0 %227  ;;  %v1740_v51 = vsel %vm42_vm3, 1.0, %v1427_v19  ;;  %v190_v56 = vshll.u32 %v189_v23, 16 }
 0x136   :  { %vm214_vm15 = vcmp.eq.f32.partialorder %v1640_v17, %v1683_v58  ;;  %vm229_vm9 = vcmp.eq.f32.partialorder %v1643_v20, %v1685_v59  ;;  %v1375_v17 = vpop.eup %1374  ;;  %1384 = vpow2.f32 %v306_v16  ;;  %v219_v4 = vcvt.f32.s32 %v1683_v58 }
 0x137   :  { %v215_v0 = vsel %vm214_vm15, %v210_v60, inf  ;;  %v230_v3 = vsel %vm229_vm9, %v225_v63, inf  ;;  %v1377_v18 = vpop.eup %1376  ;;  %v311_v24 = vsel %vm89_vm0, %v1375_v17, 0.0  ;;  %v205_v63 = vshll.u32 %v204_v50, 16 }
 0x138   :  { %216 = vmin.xlane.f32.xlu1 %v215_v0  ;;  %231 = vmin.xlane.f32.xlu0 %v230_v3  ;;  %v1379_v20 = vpop.eup %1378  ;;  %v317_v32 = vsel %vm89_vm0, %v1377_v18, 0.0  ;;  %v234_v29 = vcvt.f32.s32 %v1685_v59  ;;  %v1758_v59 = vsel %vm44_vm4, 1.0, %v1427_v19  ;;  %v1765_v17 = vsel %vm45_vm5, 1.0, %v1427_v19 }
 0x139   :  { %v1694_v7 = vpop.xlane.xlu1 %242  ;;  %v220_v18 = vshll.u32 %v219_v4, 16  ;;  %v1806_v50 = vsel %vm48_vm8, 1.0, %v1427_v19 }
 0x13a   :  { %vm244_vm10 = vcmp.eq.f32.partialorder %v1647_v22, %v1694_v7  ;;  %v1381_v30 = vpop.eup %1380  ;;  %v320_v22 = vsel %vm89_vm0, %v1379_v20, 0.0  ;;  %v235_v20 = vshll.u32 %v234_v29, 16 }
 0x13b   :  { %v245_v31 = vsel %vm244_vm10, %v240_v10, inf  ;;  %v1383_v33 = vpop.eup %1382  ;;  %v323_v34 = vsel %vm89_vm0, %v1381_v30, 0.0  ;;  %v255_v10 = vld [vmem:[%s2101_s2 + $0x18] sm:$0xff] }
 0x13c   :  { %246 = vmin.xlane.f32.xlu1 %v245_v31  ;;  %309 = vadd.xlane.f32.xlu0 %v308_v61  ;;  %v326_v36 = vsel %vm89_vm0, %v1383_v33, 0.0 }
 0x140   :  { %312 = vadd.xlane.f32.xlu1 %v311_v24  ;;  %315 = vadd.xlane.f32.xlu0 %v314_v27  ;;  %v1385_v39 = vpop.eup %1384  ;;  %v249_v24 = vcvt.f32.s32 %v1694_v7 }
 0x141   :  { %v329_v41 = vsel %vm89_vm0, %v1385_v39, 0.0 }
 0x144   :  { %318 = vadd.xlane.f32.xlu1 %v317_v32  ;;  %321 = vadd.xlane.f32.xlu0 %v320_v22  ;;  %v257_v22 = vld [vmem:[%s2101_s2 + $0x28] sm:$0xff] }
 0x148   :  { %324 = vadd.xlane.f32.xlu1 %v323_v34  ;;  %327 = vadd.xlane.f32.xlu0 %v326_v36 }
 0x14c   :  { %330 = vadd.xlane.f32.xlu1 %v329_v41 }
 0x1b9   :  { %v142_v42 = vpop.xlane.xlu0 %141 }
 0x1ba   :  { %v143_v44 = vcvt.f32.s32 %v142_v42  ;;  %v1789_v42 = vsel %vm47_vm7, 1.0, %v1427_v19  ;;  %vm450_vm7 = vcmask 7168  }
 0x1bc   :  { %v146_v40 = vadd.s32 %v145_v45, %v143_v44  ;;  %v250_v45 = vshll.u32 %v249_v24, 16 }
 0x1bd   :  { %v172_v28 = vpop.xlane.xlu0 %171  ;;  %v157_v52 = vpop.xlane.xlu1 %156 }
 0x1be   :  { %vm260_vm0 = vcmp.eq.s32.totalorder %v146_v40, %v252_v46  ;;  %v173_v9 = vcvt.f32.s32 %v172_v28  ;;  %v158_v55 = vcvt.f32.s32 %v157_v52 }
 0x1bf   :  { %v1073_v53 = vsel %vm260_vm0, 1.0, %v1427_v19 }
 0x1c0   :  { %v176_v2 = vadd.s32 %v175_v48, %v173_v9  ;;  %v410_v25 = vmul.f32 %v1073_v53, %v1718_v43  ;;  %v161_v60 = vadd.s32 %v160_v54, %v158_v55  ;;  %v1813_v54 = vld [vmem:[%s2102_s3] ss:$0 sm:$0xff]  ;;  %s1431_s3 = smov [#allocation4]  }
 0x1c1   :  { %v187_v57 = vpop.xlane.xlu1 %186  ;;  %v202_v62 = vpop.xlane.xlu0 %201  ;;  %v1818_v55 = vld [vmem:[%s2103_s4] ss:$0 sm:$0xff]  ;;  %s1057_s4 = sshll.u32 %s1431_s3, 4  ;;  %s1058_s4 = int_to_ptr.vmem [resolvable:$true] %s1057_s4 }
 0x1c2   :  { %vm262_vm1 = vcmp.eq.s32.totalorder %v176_v2, %v254_v14  ;;  %426 = vrot.lane.b32.xlu0 %v410_v25, %s1428_s15  ;;  %vm261_vm2 = vcmp.eq.s32.totalorder %v161_v60, %v253_v49  ;;  %v188_v3 = vcvt.f32.s32 %v187_v57  ;;  %v203_v6 = vcvt.f32.s32 %v202_v62  ;;  %s1402_s28 = scalar_lea.vmem %s1058_s4, 128  ;;  %p1407_p1 = scmp.lt.s32.totalorder %s1058_s4, %s1058_s4 }
 0x1c3   :  { %v1075_v0 = vsel %vm262_vm1, 1.0, %v1427_v19  ;;  %v1074_v58 = vsel %vm261_vm2, 1.0, %v1427_v19  ;;  %p1403_p0 = scmp.ne.s32.totalorder %s1058_s4, %s1402_s28  ;;  %p1408_p2 = scmp.lt.s32.totalorder %s1402_s28, %s1402_s28 }
 0x1c4   :  { %v412_v5 = vmul.f32 %v1075_v0, %v1731_v47  ;;  %v191_v16 = vadd.s32 %v190_v56, %v188_v3  ;;  %v206_v31 = vadd.s32 %v205_v63, %v203_v6  ;;  %v411_v61 = vmul.f32 %v1074_v58, %v1740_v51 }
 0x1c5   :  { %v217_v27 = vpop.xlane.xlu1 %216  ;;  %v232_v30 = vpop.xlane.xlu0 %231  ;;  %v1429_v58 = vmov 1.0|1.0   ;;  %p1409_p3 = por %p1408_p2, %p1407_p1 }
 0x1c6   :  { %vm263_vm3 = vcmp.eq.s32.totalorder %v191_v16, %v255_v10  ;;  %vm264_vm11 = vcmp.eq.s32.totalorder %v206_v31, %v256_v13  ;;  %v218_v8 = vcvt.f32.s32 %v217_v27  ;;  %v233_v32 = vcvt.f32.s32 %v232_v30  ;;  %428 = vrot.lane.b32.xlu1 %v411_v61, %s1428_s15 }
 0x1c7   :  { %v1077_v33 = vsel %vm264_vm11, 1.0, %v1427_v19  ;;  %v1076_v7 = vsel %vm263_vm3, 1.0, %v1427_v19  ;;  %p1410_p4 = pnand %p1409_p3, %p1403_p0 }
 0x1c8   :  { %v221_v34 = vadd.s32 %v220_v18, %v218_v8  ;;  %v236_v36 = vadd.s32 %v235_v20, %v233_v32  ;;  %v414_v39 = vmul.f32 %v1077_v33, %v1765_v17  ;;  %v413_v41 = vmul.f32 %v1076_v7, %v1758_v59 }
 0x1c9   :  { %v247_v37 = vpop.xlane.xlu1 %246  ;;  %v310_v44 = vpop.xlane.xlu0 %309 }
 0x1ca   :  { %vm265_vm4 = vcmp.eq.s32.totalorder %v221_v34, %v257_v22  ;;  %vm266_vm5 = vcmp.eq.s32.totalorder %v236_v36, %v258_v11  ;;  %v248_v46 = vcvt.f32.s32 %v247_v37  ;;  %1386 = vrcp.f32 %v310_v44  ;;  %434 = vrot.lane.b32.xlu0 %v414_v39, %s1428_s15  ;;  %430 = vrot.lane.b32.xlu1 %v412_v5, %s1428_s15 }
 0x1cb   :  { %v1079_v15 = vsel %vm266_vm5, 1.0, %v1427_v19  ;;  %v1078_v21 = vsel %vm265_vm4, 1.0, %v1427_v19 }
 0x1cc   :  { %v251_v40 = vadd.s32 %v250_v45, %v248_v46  ;;  %v416_v28 = vmul.f32 %v1079_v15, %v1789_v42  ;;  %v415_v48 = vmul.f32 %v1078_v21, %v1783_v35 }
 0x1cd   :  { %v313_v23 = vpop.xlane.xlu1 %312  ;;  %v316_v9 = vpop.xlane.xlu0 %315 }
 0x1ce   :  { %vm267_vm6 = vcmp.eq.s32.totalorder %v251_v40, %v259_v12  ;;  %1388 = vrcp.f32 %v313_v23  ;;  %438 = vrot.lane.b32.xlu0 %v416_v28, %s1428_s15  ;;  %432 = vrot.lane.b32.xlu1 %v413_v41, %s1428_s15 }
 0x1cf   :  { %1390 = vrcp.f32 %v316_v9  ;;  %v1080_v53 = vsel %vm267_vm6, 1.0, %v1427_v19 }
 0x1d0   :  { %v417_v26 = vmul.f32 %v1080_v53, %v1806_v50 }
 0x1d1   :  { %v319_v52 = vpop.xlane.xlu1 %318  ;;  %v322_v14 = vpop.xlane.xlu0 %321 }
 0x1d2   :  { %1392 = vrcp.f32 %v319_v52  ;;  %436 = vrot.lane.b32.xlu1 %v415_v48, %s1428_s15 }
 0x1d3   :  { %1394 = vrcp.f32 %v322_v14 }
 0x1d4   :  { %v1387_v1 = vpop.eup %1386 }
 0x1d5   :  { %v325_v2 = vpop.xlane.xlu1 %324  ;;  %v328_v25 = vpop.xlane.xlu0 %327  ;;  %vm355_vm8 = vcmp.gt.f32.partialorder %v1387_v1, %v1813_v54  ;;  %vm370_vm12 = vcmp.le.f32.partialorder %v1387_v1, %v1818_v55  ;;  %v402_v49 = vmul.f32 %v1387_v1, %v1718_v43 }
 0x1d6   :  { %1396 = vrcp.f32 %v325_v2  ;;  %440 = vrot.lane.b32.xlu1 %v417_v26, %s1428_s15  ;;  %vm1825_vm13 = vmand %vm355_vm8, %vm370_vm12 }
 0x1d7   :  { %1398 = vrcp.f32 %v328_v25  ;;  %v1083_v60 = vsel %vm1825_vm13, 1.0, %v1427_v19  ;;  %v1834_v63 = vsel %vm450_vm7, %v1718_v43, %v402_v49 }
 0x1d8   :  { %v1389_v4 = vpop.eup %1388  ;;  %v1836_v29 = vsub.f32 %v1083_v60, %v1083_v60 }
 0x1d9   :  { %v1391_v57 = vpop.eup %1390  ;;  %v331_v62 = vpop.xlane.xlu1 %330  ;;  %vm356_vm14 = vcmp.gt.f32.partialorder %v1389_v4, %v1813_v54  ;;  %vm371_vm15 = vcmp.le.f32.partialorder %v1389_v4, %v1818_v55  ;;  %v403_v0 = vmul.f32 %v1389_v4, %v1740_v51 }
 0x1da   :  { %1400 = vrcp.f32 %v331_v62  ;;  %vm379_vm9 = vmand %vm356_vm14, %vm371_vm15  ;;  %v599_v3 = vand.u32 4294901760, %v1836_v29  ;;  %vm357_vm10 = vcmp.gt.f32.partialorder %v1391_v57, %v1813_v54  ;;  %vm372_vm0 = vcmp.le.f32.partialorder %v1391_v57, %v1818_v55 }
 0x1db   :  { %v1084_v43 = vsel %vm379_vm9, 1.0, %v1427_v19  ;;  %vm1847_vm1 = vmpackc.low %vm379_vm9, %vm1825_vm13  ;;  %v1853_v5 = vsel %vm450_vm7, %v1740_v51, %v403_v0  ;;  %v404_v10 = vmul.f32 %v1391_v57, %v1731_v47 }
 0x1dc   :  { %v1393_v13 = vpop.eup %1392  ;;  %1285 = vmatpush3.bf16.msk.msra.mxu1 %vm1847_vm1, %v1429_v58  ;;  %v600_v16 = vsub.f32 %v1836_v29, %v599_v3  ;;  %v1860_v31 = vsub.f32 %v1084_v43, %v1084_v43  ;;  %1321 = vmatpush3.bf16.msk.msra.mxu0 %vm1847_vm1, %v1429_v58  ;;  %vm380_vm2 = vmand %vm357_vm10, %vm372_vm0 }
 0x1dd   :  { %v1395_v61 = vpop.eup %1394  ;;  %1286 = vmatprep.subr.bf16.mxu1 %v1426_v38  ;;  %1322 = vmatprep.subr.bf16.mxu0 %v1426_v38  ;;  %vm358_vm3 = vcmp.gt.f32.partialorder %v1393_v13, %v1813_v54  ;;  %vm373_vm11 = vcmp.le.f32.partialorder %v1393_v13, %v1818_v55  ;;  %v1085_v51 = vsel %vm380_vm2, 1.0, %v1427_v19  ;;  %v1872_v18 = vsel %vm450_vm7, %v1731_v47, %v404_v10 }
 0x1de   :  { %v601_v20 = vand.u32 4294901760, %v600_v16  ;;  %v606_v24 = vand.u32 4294901760, %v1860_v31  ;;  %vm381_vm4 = vmand %vm358_vm3, %vm373_vm11  ;;  %v1875_v27 = vsub.f32 %v1085_v51, %v1085_v51  ;;  %vm359_vm5 = vcmp.gt.f32.partialorder %v1395_v61, %v1813_v54 }
 0x1df   :  { %v1086_v30 = vsel %vm381_vm4, 1.0, %v1427_v19  ;;  %vm1879_vm6 = vmpackc.low %vm381_vm4, %vm380_vm2  ;;  %vm374_vm8 = vcmp.le.f32.partialorder %v1395_v61, %v1818_v55  ;;  %v406_v32 = vmul.f32 %v1395_v61, %v1765_v17  ;;  %v405_v47 = vmul.f32 %v1393_v13, %v1758_v59 }
 0x1e0   :  { %v1397_v22 = vpop.eup %1396  ;;  %v607_v11 = vsub.f32 %v1860_v31, %v606_v24  ;;  %1288 = vmatpush3.bf16.msk.msra.mxu1 %vm1879_vm6, %v1429_v58  ;;  %v1890_v33 = vsub.f32 %v1086_v30, %v1086_v30  ;;  %1324 = vmatpush3.bf16.msk.msra.mxu0 %vm1879_vm6, %v1429_v58  ;;  %vm1895_vm12 = vmand %vm359_vm5, %vm374_vm8  ;;  %v1899_v34 = vpack.c.bf16 %v606_v24, %v599_v3  ;;  %v613_v36 = vand.u32 4294901760, %v1875_v27 }
 0x1e1   :  { %v1399_v39 = vpop.eup %1398  ;;  %1289 = vmatprep.subr.bf16.mxu1 %v1426_v38  ;;  %1325 = vmatprep.subr.bf16.mxu0 %v1426_v38  ;;  %vm360_vm13 = vcmp.gt.f32.partialorder %v1397_v22, %v1813_v54  ;;  %vm375_vm14 = vcmp.le.f32.partialorder %v1397_v22, %v1818_v55  ;;  %v1087_v41 = vsel %vm1895_vm12, 1.0, %v1427_v19  ;;  %v1911_v45 = vsel %vm450_vm7, %v1765_v17, %v406_v32 }
 0x1e2   :  { %v608_v37 = vand.u32 4294901760, %v607_v11  ;;  %vm383_vm15 = vmand %vm360_vm13, %vm375_vm14  ;;  %v1913_v44 = vsub.f32 %v1087_v41, %v1087_v41  ;;  %vm361_vm9 = vcmp.gt.f32.partialorder %v1399_v39, %v1813_v54  ;;  %vm376_vm10 = vcmp.le.f32.partialorder %v1399_v39, %v1818_v55 }
 0x1e3   :  { %v1088_v46 = vsel %vm383_vm15, 1.0, %v1427_v19  ;;  %vm1920_vm0 = vmpackc.low %vm383_vm15, %vm1895_vm12  ;;  %v408_v15 = vmul.f32 %v1399_v39, %v1789_v42  ;;  %v1927_v17 = vsel %vm450_vm7, %v1758_v59, %v405_v47  ;;  %v407_v21 = vmul.f32 %v1397_v22, %v1783_v35 }
 0x1e4   :  { %v1401_v40 = vpop.eup %1400  ;;  %1291 = vmatpush3.bf16.msk.msra.mxu1 %vm1920_vm0, %v1429_v58  ;;  %v1933_v28 = vsub.f32 %v1088_v46, %v1088_v46  ;;  %1327 = vmatpush3.bf16.msk.msra.mxu0 %vm1920_vm0, %v1429_v58  ;;  %vm1938_vm2 = vmand %vm361_vm9, %vm376_vm10  ;;  %v1942_v23 = vpack.c.bf16 %v608_v37, %v601_v20  ;;  %v620_v59 = vand.u32 4294901760, %v1890_v33  ;;  %v614_v9 = vsub.f32 %v1875_v27, %v613_v36 }
 0x1e5   :  { %1292 = vmatprep.subr.bf16.mxu1 %v1426_v38  ;;  %1328 = vmatprep.subr.bf16.mxu0 %v1426_v38  ;;  %vm362_vm3 = vcmp.gt.f32.partialorder %v1401_v40, %v1813_v54  ;;  %vm377_vm11 = vcmp.le.f32.partialorder %v1401_v40, %v1818_v55  ;;  %v1089_v52 = vsel %vm1938_vm2, 1.0, %v1427_v19  ;;  %v1955_v14 = vsel %vm450_vm7, %v1789_v42, %v408_v15 }
 0x1e6   :  { %vm385_vm4 = vmand %vm362_vm3, %vm377_vm11  ;;  %v1957_v53 = vsub.f32 %v1089_v52, %v1089_v52  ;;  %v456_v1 = vsel %vm450_vm7, %v1783_v35, %v407_v21  ;;  %v409_v26 = vmul.f32 %v1401_v40, %v1806_v50  ;;  %v1962_v2 = vpack.c.bf16 %v620_v59, %v613_v36 }
 0x1e7   :  { %v1090_v54 = vsel %vm385_vm4, 1.0, %v1427_v19  ;;  %vm1967_vm5 = vmpackc.low %vm385_vm4, %vm1938_vm2  ;;  %v615_v42 = vand.u32 4294901760, %v614_v9  ;;  %v621_v25 = vsub.f32 %v1890_v33, %v620_v59  ;;  %v627_v49 = vand.u32 4294901760, %v1913_v44 }
 0x1e8   :  { %1294 = vmatpush3.bf16.msk.msra.mxu1 %vm1967_vm5, %v1429_v58  ;;  %v1976_v35 = vsub.f32 %v1090_v54, %v1090_v54  ;;  %1330 = vmatpush3.bf16.msk.msra.mxu0 %vm1967_vm5, %v1429_v58  ;;  %v458_v56 = vsel %vm450_vm7, %v1806_v50, %v409_v26  ;;  %v634_v60 = vand.u32 4294901760, %v1933_v28  ;;  %v641_v4 = vand.u32 4294901760, %v1957_v53 }
 0x1e9   :  { %1331 = vmatprep.subr.bf16.mxu0 %v1426_v38  ;;  %1295 = vmatprep.subr.bf16.mxu1 %v1426_v38  ;;  %v622_v57 = vand.u32 4294901760, %v621_v25  ;;  %v628_v62 = vsub.f32 %v1913_v44, %v627_v49  ;;  %v1308_v0 = vpack.c.bf16 %v1860_v31, %v1836_v29  ;;  %v1311_v3 = vpack.c.bf16 %v1890_v33, %v1875_v27 }
 0x1ea   :  { %v1992_v43 = vpack.c.bf16 %v634_v60, %v627_v49  ;;  %v635_v50 = vsub.f32 %v1933_v28, %v634_v60  ;;  %v648_v10 = vand.u32 4294901760, %v1976_v35  ;;  %v642_v13 = vsub.f32 %v1957_v53, %v641_v4 }
 0x1eb   :  { %v1997_v16 = vpack.c.bf16 %v622_v57, %v615_v42  ;;  %v1314_v61 = vpack.c.bf16 %v1933_v28, %v1913_v44  ;;  %v1317_v51 = vpack.c.bf16 %v1976_v35, %v1957_v53  ;;  %v629_v20 = vand.u32 4294901760, %v628_v62 }
 0x1ec   :  { %v636_v24 = vand.u32 4294901760, %v635_v50  ;;  %v2003_v30 = vpack.c.bf16 %v648_v10, %v641_v4  ;;  %v649_v32 = vsub.f32 %v1976_v35, %v648_v10  ;;  %v643_v22 = vand.u32 4294901760, %v642_v13 }
 0x1ed   :  { %vm459_vm7 = vcmask 15360   ;;  %vm468_vm8 = vcmask 23552   ;;  %vm1430_vm12 = vmmov 0   ;;  %vm509_vm13 = vcmask 523264  }
 0x1ee   :  { %v1302_v47 = vpack.c.bf16 %v636_v24, %v629_v20  ;;  %v650_v11 = vand.u32 4294901760, %v649_v32  ;;  %1242 = vmatprep.mubr.msk.f32.mxu0 %vm1430_vm12, %v1427_v19  ;;  %1185 = vmatprep.mubr.msk.f32.mxu1 %vm1430_vm12, %v1427_v19 }
 0x1f0   :  { %v2006_v7 = vpack.c.bf16 %v650_v11, %v643_v22 }
 0x234   :  { %v427_v36 = vpop.permute.xlu0 %426 }
 0x235   :  { %v460_v39 = vsel %vm459_vm7, %v1834_v63, %v427_v36 }
 0x236   :  { %v469_v41 = vsel %vm468_vm8, %v460_v39, 0.0 }
 0x237   :  { %477 = vxpose.xlu0.b32.start [1/8] (short) (narrow) %v469_v41, 8 }
 0x238   :  { %v429_v37 = vpop.permute.xlu1 %428 }
 0x239   :  { %v461_v46 = vsel %vm459_vm7, %v1853_v5, %v429_v37 }
 0x23a   :  { %v470_v15 = vsel %vm468_vm8, %v461_v46, 0.0 }
 0x23b   :  { %478 = vxpose.xlu0.b32.cont [2/8] (short) (narrow) %v470_v15, 8 }
 0x23c   :  { %v431_v21 = vpop.permute.xlu1 %430  ;;  %v435_v48 = vpop.permute.xlu0 %434 }
 0x23d   :  { %v462_v63 = vsel %vm459_vm7, %v1872_v18, %v431_v21  ;;  %v464_v52 = vsel %vm459_vm7, %v1911_v45, %v435_v48 }
 0x23e   :  { %v471_v40 = vsel %vm468_vm8, %v462_v63, 0.0  ;;  %v473_v54 = vsel %vm468_vm8, %v464_v52, 0.0 }
 0x23f   :  { %479 = vxpose.xlu0.b32.cont [3/8] (short) (narrow) %v471_v40, 8 }
 0x240   :  { %v433_v59 = vpop.permute.xlu1 %432  ;;  %v439_v18 = vpop.permute.xlu0 %438 }
 0x241   :  { %v463_v5 = vsel %vm459_vm7, %v1927_v17, %v433_v59  ;;  %v466_v49 = vsel %vm459_vm7, %v1955_v14, %v439_v18 }
 0x242   :  { %v472_v9 = vsel %vm468_vm8, %v463_v5, 0.0  ;;  %v475_v60 = vsel %vm468_vm8, %v466_v49, 0.0 }
 0x243   :  { %480 = vxpose.xlu0.b32.cont [4/8] (short) (narrow) %v472_v9, 8 }
 0x244   :  { %v437_v26 = vpop.permute.xlu1 %436 }
 0x245   :  { %v465_v42 = vsel %vm459_vm7, %v456_v1, %v437_v26 }
 0x246   :  { %v474_v25 = vsel %vm468_vm8, %v465_v42, 0.0 }
 0x247   :  { %481 = vxpose.xlu0.b32.cont [5/8] (short) (narrow) %v473_v54, 8 }
 0x248   :  { %v441_v17 = vpop.permute.xlu1 %440 }
 0x249   :  { %v467_v4 = vsel %vm459_vm7, %v458_v56, %v441_v17 }
 0x24a   :  { %v476_v45 = vsel %vm468_vm8, %v467_v4, 0.0 }
 0x24b   :  { %482 = vxpose.xlu0.b32.cont [6/8] (short) (narrow) %v474_v25, 8 }
 0x24f   :  { %483 = vxpose.xlu0.b32.cont [7/8] (short) (narrow) %v475_v60, 8 }
 0x253   :  { %484 = vxpose.xlu0.b32.end [8/8] (short) (narrow) %v476_v45, 8 }
 0x2b7   :  { %v493_v57 = vpop.trf.xlu0 }
 0x2b8   :  { %v511_v1 = vsel %vm509_vm13, %v493_v57, 0 }
 0x2b9   :  { %v586_v62 = vand.u32 4294901760, %v511_v1 }
 0x2bb   :  { %v587_v50 = vsub.f32 %v511_v1, %v586_v62 }
 0x2bd   :  { %v588_v10 = vand.u32 4294901760, %v587_v50 }
 0x2bf   :  { %1243 = vmatmul.mubr.f32.vlgmr.msra.gmra.mrb[0].mxu0 %v588_v10  ;;  %v589_v13 = vsub.f32 %v587_v50, %v588_v10 }
 0x2c0   :  { %1333 = vmatpush3.bf16.msra.mxu0 %v1899_v34  ;;  %1261 = vmatprep.mubr.msk.f32.mxu0 %vm1430_vm12, %v1427_v19 }
 0x2c1   :  { %1334 = vmatprep.subr.bf16.mxu0 %v1426_v38  ;;  %v590_v14 = vand.u32 4294901760, %v589_v13 }
 0x2c3   :  { %1186 = vmatmul.mubr.f32.vlgmr.msra.gmra.mrb[0].mxu1 %v590_v14 }
 0x2c4   :  { %1297 = vmatpush3.bf16.msra.mxu1 %v1942_v23  ;;  %1336 = vmatpush3.bf16.msra.mxu0 %v1962_v2 }
 0x2c5   :  { %1298 = vmatprep.subr.bf16.mxu1 %v1426_v38  ;;  %1337 = vmatprep.subr.bf16.mxu0 %v1426_v38 }
 0x2c6   :  { %1204 = vmatprep.mubr.msk.f32.mxu1 %vm1430_vm12, %v1427_v19 }
 0x2c8   :  { %1300 = vmatpush3.bf16.msra.mxu1 %v1997_v16  ;;  %1339 = vmatpush3.bf16.msra.mxu0 %v1992_v43 }
 0x2c9   :  { %1301 = vmatprep.subr.bf16.mxu1 %v1426_v38  ;;  %1340 = vmatprep.subr.bf16.mxu0 %v1426_v38 }
 0x2cc   :  { %1303 = vmatpush3.bf16.msra.mxu1 %v1302_v47  ;;  %1342 = vmatpush3.bf16.msra.mxu0 %v2003_v30 }
 0x2cd   :  { %1304 = vmatprep.subr.bf16.mxu1 %v1426_v38  ;;  %1343 = vmatprep.subr.bf16.mxu0 %v1426_v38 }
 0x2cf   :  { %1262 = vmatmul.mubr.f32.vlgmr.msra.gmra.mrb[0].mxu0 %v586_v62 }
 0x2d0   :  { %1306 = vmatpush3.bf16.msra.mxu1 %v2006_v7  ;;  %1345 = vmatpush3.bf16.msk.msra.mxu0 %vm1847_vm1, %v1429_v58 }
 0x2d1   :  { %1307 = vmatprep.subr.bf16.mxu1 %v1426_v38  ;;  %1346 = vmatprep.subr.bf16.mxu0 %v1426_v38 }
 0x2d2   :  { %1280 = vmatprep.mubr.msk.f32.mxu0 %vm1430_vm12, %v1427_v19 }
 0x2d3   :  { %1205 = vmatmul.mubr.f32.vlgmr.msra.gmra.mrb[0].mxu1 %v586_v62 }
 0x2d4   :  { %1309 = vmatpush3.bf16.msra.mxu1 %v1308_v0  ;;  %1348 = vmatpush3.bf16.msk.msra.mxu0 %vm1879_vm6, %v1429_v58 }
 0x2d5   :  { %1310 = vmatprep.subr.bf16.mxu1 %v1426_v38  ;;  %1349 = vmatprep.subr.bf16.mxu0 %v1426_v38 }
 0x2d6   :  { %1223 = vmatprep.mubr.msk.f32.mxu1 %vm1430_vm12, %v1427_v19 }
 0x2d8   :  { %1312 = vmatpush3.bf16.msra.mxu1 %v1311_v3  ;;  %1351 = vmatpush3.bf16.msk.msra.mxu0 %vm1920_vm0, %v1429_v58 }
 0x2d9   :  { %1313 = vmatprep.subr.bf16.mxu1 %v1426_v38  ;;  %1352 = vmatprep.subr.bf16.mxu0 %v1426_v38 }
 0x2dc   :  { %1315 = vmatpush3.bf16.msra.mxu1 %v1314_v61  ;;  %1354 = vmatpush3.bf16.msk.msra.mxu0 %vm1967_vm5, %v1429_v58 }
 0x2dd   :  { %1316 = vmatprep.subr.bf16.mxu1 %v1426_v38 }
 0x2df   :  { %1281 = vmatmul.mubr.f32.vlgmr.msra.gmra.mrb[0].mxu0 %v586_v62 }
 0x2e0   :  { %1318 = vmatpush3.bf16.msra.mxu1 %v1317_v51 }
 0x2e3   :  { %1224 = vmatmul.mubr.f32.vlgmr.msra.gmra.mrb[0].mxu1 %v587_v50 }
 0x3b2   :  { %v1046_v19 = vpop.f32.mrb[0].mxu0 }
 0x3b3   :  { %v1282_v29 = vpop.f32.mrb[1].mxu0 }
 0x3b6   :  { %v791_v6 = vpop.f32.mrb[0].mxu1 }
 0x3b7   :  { %v1355_v31 = vadd.f32 %v1046_v19, %v791_v6  ;;  %v1225_v27 = vpop.f32.mrb[1].mxu1 }
 0x3b9   :  { %1050 = vst [vmem:[#allocation4] sm:$0xff] %v1355_v31 }
 0x3ba   :  { %1413 = shalt.err (!%p1410_p4)
}
 0x3bb   :  { %s1414_s6 = scalar_lea.hbm %s2104_s5, 128 }
 0x3bc   :  { %p1415_p5 = scmp.ne.s32.totalorder %s2104_s5, %s1414_s6  ;;  %p1418_p6 = scmp.lt.u32.totalorder %s1414_s6, %s2104_s5 }
 0x3be   :  { %p1420_p7 = pnand %p1418_p6, %p1415_p5 }
 0x3c0   :  { %1423 = shalt.err (!%p1420_p7)
}
 0x3c1   :  { %1060 = dma.vmem_to_hbm [thread:$0]  %s1058_s4, 128, %s2104_s5, [#allocation5]  }
 0x3c2   :  { %1424 = dma.done.wait [#allocation5], 128  }
 0x3c3   :  { %1425 = vsyncadd [#allocation5], 4294967168 }
 0x3c4   :  { %1064 = vsyncpa [#allocation5], 1 }

</bundles_post_ra>
